<compile_context>
chip_gen: v5e
topology: v5e:2x2
jax: 0.10.0
libtpu: 0.0.40
codegen_flags: <defaults>
</compile_context>

<pallas_src>
import jax
import jax.numpy as jnp
from jax.experimental import pallas as pl
from jax.experimental.pallas import tpu as pltpu


def _bbox_head_kernel(x_ref, w_ref, b_ref, o_ref):
    # x_ref: (C_in, thw)   w_ref: (K, C_in)   b_ref: (K, 1)   o_ref: (K, thw)
    acc = jnp.dot(w_ref[...], x_ref[...], preferred_element_type=jnp.float32)
    o_ref[...] = (acc + b_ref[...].astype(jnp.float32)).astype(o_ref.dtype)


def _vmem_capacity_bytes():
    try:
        return int(pltpu.get_tpu_info().vmem_capacity_bytes)
    except Exception:
        return 64 << 20          # conservative fallback: v7x per-TC physical VMEM


def _choose_thw(HW, N, C_in, K, x_itemsize, o_itemsize, vmem_cap):
    # Size the spatial (lane) tile so the double-buffered pipeline footprint
    #   2 * (C_in*x_itemsize + K*o_itemsize) * thw
    # fills a generous slice of VMEM.  Big tiles amortize the ~0.35 us fixed
    # per-grid-step cost against per-step DMA while staying well under v7x's
    # 64 MiB physical VMEM (and v5e/v6e's 128 MiB).
    budget = min(24 << 20, (vmem_cap * 2) // 5)      # <= 24 MiB for pipeline bufs
    per_lane = 2 * (C_in * x_itemsize + K * o_itemsize)
    t = (budget // max(1, per_lane)) // 128 * 128
    t = max(128, t)

    if HW <= t:
        # Full-extent spatial block, unless that collapses the call to a single
        # grid step (N == 1): keep >= 2 blocks so v7x's two TensorCores both
        # get work.  Cost on single-TC chips: one extra ~0.35 us grid step.
        if N == 1 and HW >= 256:
            half = -(-HW // 2)                       # ceil(HW / 2)
            return -(-half // 128) * 128             # lane-aligned, < HW
        return HW                                    # full extent: no 128 rule
    return t                                         # multiple of 128; ragged tail masked


def bbox_head(x_nchw, weight, bias, num_anchors):
    """x_nchw: (N, C_in, H, W); weight: (A*4, C_in, 1, 1); bias: (A*4,)."""
    N, C_in, H, W = x_nchw.shape
    K = num_anchors * 4
    assert weight.shape == (K, C_in, 1, 1)

    HW = H * W
    x3 = x_nchw.reshape(N, C_in, HW)        # pure view of NCHW, no extra pass
    w_mat = weight[:, :, 0, 0]              # (K, C_in), grid-resident
    b_mat = bias.reshape(K, 1)              # (K, 1), lane-broadcast in kernel

    out_dtype = x_nchw.dtype
    x_isz = x_nchw.dtype.itemsize
    o_isz = jnp.dtype(out_dtype).itemsize

    vmem_cap = _vmem_capacity_bytes()
    thw = _choose_thw(HW, N, C_in, K, x_isz, o_isz, vmem_cap)
    n_spatial = pl.cdiv(HW, thw)

    # Explicit scoped-VMEM budget: double-buffered in/out tiles + resident
    # weights/bias + ~25% headroom.  Keeps the big tiles compiling on v5e's
    # 16 MiB default scoped limit without overshooting v7x's physical VMEM.
    footprint = (2 * thw * (C_in * x_isz + K * o_isz)
                 + K * C_in * weight.dtype.itemsize
                 + K * bias.dtype.itemsize)
    vmem_limit = min(int(footprint * 1.25) + (2 << 20), (vmem_cap * 9) // 10)
    vmem_limit = max(vmem_limit, 4 << 20)

    cost = pl.CostEstimate(
        flops=2 * N * HW * C_in * K,
        transcendentals=0,
        bytes_accessed=(N * C_in * HW * x_isz
                        + N * K * HW * o_isz
                        + K * C_in * weight.dtype.itemsize
                        + K * bias.dtype.itemsize),
    )

    # Spatial axis leads the grid so megacore sharding splits it even at N<=2.
    out_nkhw = pl.pallas_call(
        _bbox_head_kernel,
        out_shape=jax.ShapeDtypeStruct((N, K, HW), out_dtype),
        grid_spec=pltpu.PrefetchScalarGridSpec(
            num_scalar_prefetch=0,
            grid=(n_spatial, N),
            in_specs=[
                pl.BlockSpec((None, C_in, thw), lambda j, n: (n, 0, j)),
                pl.BlockSpec((K, C_in), lambda j, n: (0, 0)),
                pl.BlockSpec((K, 1), lambda j, n: (0, 0)),
            ],
            out_specs=pl.BlockSpec((None, K, thw), lambda j, n: (n, 0, j)),
        ),
        compiler_params=pltpu.CompilerParams(
            dimension_semantics=("parallel", "parallel"),
            vmem_limit_bytes=vmem_limit),
        cost_estimate=cost,
    )(x3, w_mat, b_mat)

    # (N, K, HW) -> (N, HW, K) -> (N, HW*A, 4) on the SMALL output tensor.
    # K's internal layout is (A, 4), so this matches permute(0,2,3,1).view.
    # TODO(synk): if the downstream box-decode consumes (N, K, HW) directly (or
    # is jitted together so XLA fuses this), drop the transpose; likewise the
    # sibling Class/Landmark heads could be fused into this call to read x once.
    return jnp.transpose(out_nkhw, (0, 2, 1)).reshape(N, HW * num_anchors, 4)


def _ref(x, weight, bias, num_anchors):
    N, _, H, W = x.shape
    r = jnp.einsum("nchw,kc->nhwk", x, weight[:, :, 0, 0]) + bias
    return r.reshape(N, H * W * num_anchors, 4)


if __name__ == "__main__":
    key = jax.random.PRNGKey(0)
    k1, k2, k3 = jax.random.split(key, 3)

    # Case 1: N=2, full-extent spatial block.
    N, C_in, Hs, Ws = 2, 32, 16, 16
    num_anchors = 2
    K = num_anchors * 4

    x = jax.random.normal(k1, (N, C_in, Hs, Ws), dtype=jnp.float32)
    weight = jax.random.normal(k2, (K, C_in, 1, 1), dtype=jnp.float32) * 0.05
    bias = jax.random.normal(k3, (K,), dtype=jnp.float32) * 0.05

    out = jax.block_until_ready(bbox_head(x, weight, bias, num_anchors))
    ref = _ref(x, weight, bias, num_anchors)
    assert out.shape == (N, Hs * Ws * num_anchors, 4)
    assert jnp.allclose(out, ref, atol=1e-4, rtol=1e-4)

    # Case 2: N=1 with non-128-multiple HW -> exercises the >=2-block split
    # (megacore) and the masked ragged spatial tail.
    x1 = jax.random.normal(k1, (1, C_in, 20, 20), dtype=jnp.float32)
    out1 = jax.block_until_ready(bbox_head(x1, weight, bias, num_anchors))
    ref1 = _ref(x1, weight, bias, num_anchors)
    assert out1.shape == (1, 20 * 20 * num_anchors, 4)
    assert jnp.allclose(out1, ref1, atol=1e-4, rtol=1e-4)

    print("KERNEL_OK")
</pallas_src>

<mosaic_0001>
module attributes {stable_mosaic.version = 11 : i64} {
  func.func @_bbox_head_kernel(%arg0: i32, %arg1: i32, %arg2: memref<1x32x256xf32, #tpu.memory_space<vmem>>, %arg3: memref<8x32xf32, #tpu.memory_space<vmem>>, %arg4: memref<8x1xf32, #tpu.memory_space<vmem>>, %arg5: memref<1x8x256xf32, #tpu.memory_space<vmem>>) attributes {dimension_semantics = [#tpu.dimension_semantics<parallel>, #tpu.dimension_semantics<parallel>], iteration_bounds = array<i64: 1, 2>, scalar_prefetch = 0 : i64, scratch_operands = 0 : i64, tpu.core_type = #tpu.core_type<tc>, window_params = [{transform_indices = @transform_0, window_bounds = array<i64: 1, 32, 256>}, {pipeline_mode = #tpu.pipeline_mode<synchronous>, transform_indices = @transform_1, window_bounds = array<i64: 8, 32>}, {pipeline_mode = #tpu.pipeline_mode<synchronous>, transform_indices = @transform_2, window_bounds = array<i64: 8, 1>}, {transform_indices = @transform_3, window_bounds = array<i64: 1, 8, 256>}]} {
    %c0 = arith.constant 0 : index
    %c0_0 = arith.constant 0 : index
    %0 = vector.load %arg3[%c0, %c0_0] : memref<8x32xf32, #tpu.memory_space<vmem>>, vector<8x32xf32>
    %c0_1 = arith.constant 0 : index
    %c0_2 = arith.constant 0 : index
    %c0_3 = arith.constant 0 : index
    %1 = vector.load %arg2[%c0_1, %c0_2, %c0_3] : memref<1x32x256xf32, #tpu.memory_space<vmem>>, vector<1x32x256xf32>
    %2 = vector.shape_cast %1 : vector<1x32x256xf32> to vector<32x256xf32>
    %cst = arith.constant dense<0.000000e+00> : vector<8x256xf32>
    %3 = tpu.matmul %0, %2, %cst {dimension_numbers = #tpu.dot_dimension_numbers<[1], [0], [0], [1], [0, 0, 1, 1], [], []>} : vector<8x32xf32>, vector<32x256xf32>, vector<8x256xf32> -> vector<8x256xf32>
    %c0_4 = arith.constant 0 : index
    %c0_5 = arith.constant 0 : index
    %4 = vector.load %arg4[%c0_4, %c0_5] : memref<8x1xf32, #tpu.memory_space<vmem>>, vector<8x1xf32>
    %5 = vector.broadcast %4 : vector<8x1xf32> to vector<8x256xf32>
    %6 = arith.addf %3, %5 : vector<8x256xf32>
    %c0_6 = arith.constant 0 : index
    %c0_7 = arith.constant 0 : index
    %c0_8 = arith.constant 0 : index
    %7 = vector.load %arg5[%c0_6, %c0_7, %c0_8] : memref<1x8x256xf32, #tpu.memory_space<vmem>>, vector<1x8x256xf32>
    %8 = vector.shape_cast %7 : vector<1x8x256xf32> to vector<8x256xf32>
    %9 = vector.shape_cast %6 : vector<8x256xf32> to vector<1x8x256xf32>
    tpu.vector_store %arg5[%c0_6, %c0_7, %c0_8], %9 {strides = array<i32>} : memref<1x8x256xf32, #tpu.memory_space<vmem>>, vector<1x8x256xf32>,
    return
  }
  func.func @transform_0(%arg0: i32, %arg1: i32) -> (i32, i32, i32) {
    %c0_i32 = arith.constant 0 : i32
    %c0_i32_0 = arith.constant 0 : i32
    return %arg1, %c0_i32, %arg0 : i32, i32, i32
  }
  func.func @transform_1(%arg0: i32, %arg1: i32) -> (i32, i32) {
    %c0_i32 = arith.constant 0 : i32
    %c0_i32_0 = arith.constant 0 : i32
    %c0_i32_1 = arith.constant 0 : i32
    return %c0_i32, %c0_i32_0 : i32, i32
  }
  func.func @transform_2(%arg0: i32, %arg1: i32) -> (i32, i32) {
    %c0_i32 = arith.constant 0 : i32
    %c0_i32_0 = arith.constant 0 : i32
    %c0_i32_1 = arith.constant 0 : i32
    return %c0_i32, %c0_i32_0 : i32, i32
  }
  func.func @transform_3(%arg0: i32, %arg1: i32) -> (i32, i32, i32) {
    %c0_i32 = arith.constant 0 : i32
    %c0_i32_0 = arith.constant 0 : i32
    return %arg1, %c0_i32, %arg0 : i32, i32, i32
  }
}

</mosaic_0001>

<bundles_post_ra>
// kernel: tpu_custom_call.1
= control target key start
LH: loop header
LB: loop body
LE: loop exit
PB: predicated region body
PF: predicated region fallthrough
CT: control target
= control target key end

     0   :  { %8 = vsyncpa [#allocation3], 0  ;;  %s724_s0 = inlined_call_operand.hbm [shape: f32[2,32,256], index: 0, kind: input, shape index: {}]   ;;  %s725_s1 = inlined_call_operand.vmem [shape: f32[8,32], index: 1, kind: input, shape index: {}]   ;;  %s726_s2 = inlined_call_operand.vmem [shape: f32[8,1], index: 2, kind: input, shape index: {}]   ;;  %s727_s3 = inlined_call_operand.hbm [shape: f32[2,8,256], index: 3, kind: output, shape index: {}]  }
   0x1   :  { %10 = vsyncpa [#allocation3 + $0x1], 0 }
   0x2   :  { %11 = vsyncpa [#allocation4], 0 }
   0x3   :  { %13 = vsyncpa [#allocation4 + $0x1], 0  ;;  %s597_s12 = smov 0   ;;  %s599_s13 = smov 0  }
   0x4   :  { %s601_s14 = smov 0   ;;  %s603_s15 = smov 0  }
   0x5   :  { %s605_s16 = smov 0   ;;  %s607_s17 = smov 0  }
   0x6 LB: > { %s375_s18 = sadd.s32 4294967295, %s572_s17   ;;  %s376_s19 = sadd.s32 4294967294, %s572_s17   ;;  %s572_s17 = sphi %s607_s17, %s19_s17   ;;  %s568_s16 = sphi %s605_s16, %s736_s16   ;;  %s564_s15 = sphi %s603_s15, %s735_s15   ;;  %s560_s14 = sphi %s601_s14, %s734_s14   ;;  %s556_s13 = sphi %s599_s13, %s733_s13   ;;  %s552_s12 = sphi %s597_s12, %s732_s12  }
   0x7   : > { %s28_s20 = sadd.s32 1, %s568_s16  ;;  %s40_s21 = sadd.s32 1, %s560_s14 }
   0x8   : > { %p29_p0 = scmp.ge.s32.totalorder %s28_s20, 2  ;;  %p47_p1 = scmp.ne.s32.totalorder %s560_s14, %s556_s13 }
   0x9   : > { %p48_p2 = scmp.eq.s32.totalorder %s572_s17, 0  ;;  %p53_p3 = scmp.ne.s32.totalorder %s556_s13, %s552_s12 }
   0xa   : > { %s738_s20 = smov (%p29_p0, %s28_s20), 0  ;;  %p54_p5 = scmp.eq.s32.totalorder %s375_s18, 0 }
   0xb   : > { %p638_p4 = por %p48_p2, %p47_p1  ;;  %s35_s23 = ssub.s32 %s568_s16, %s738_s20 }
   0xc   : > { %p121_p6 = scmp.eq.s32.totalorder %s375_s18, 1  ;;  %p38_p7 = scmp.eq.s32.totalorder %s35_s23, 0 }
   0xd   : > { %p644_p8 = por %p54_p5, %p53_p3  ;;  %p127_p10 = scmp.eq.s32.totalorder %s376_s19, 1 }
   0xe   : > { %p648_p9 = por %p121_p6, %p47_p1  ;;  %p378_p12 = scmp.ge.s32.totalorder %s572_s17, 2 }
   0xf   : > { %s653_s26 = scalar_select %p38_p7, %s560_s14, %s40_s21  }
  0x10   : > { %p655_p11 = por %p127_p10, %p53_p3  ;;  %p406_p13 = scmp.lt.s32.totalorder %s572_s17, 2 }
  0x11   : > { %s153_s28 = sand.u32 1, %s560_s14   ;;  %s392_s30 = sshll.u32 %s568_s16, 6 }
  0x12   : > { %s379_s29 = sshll.u32 %s153_s28, 6  ;;  %s164_s6 = scalar_lea.hbm %s724_s0, %s392_s30 }
  0x13   : > { %s157_s7 = scalar_lea.vmem [#allocation2], %s379_s29  ;;  %s165_s9 = sshll.u32 %s164_s6, 4  ;;  %s166_s9 = int_to_ptr.hbm [resolvable:$true] %s165_s9 }
  0x14   : > { %s167_s8 = sshll.u32 %s157_s7, 4  ;;  %p399_p0 = pnand %p406_p13, %p638_p4  ;;  %s168_s8 = int_to_ptr.vmem [resolvable:$true] %s167_s8 }
  0x15   : > { %p382_p1 = scmp.ge.s32.totalorder %s572_s17, 1  ;;  %s154_s10 = scalar_lea.sflag [#allocation3], %s153_s28 }
  0x16   : > { %s574_s11 = smov 256   ;;  %s575_s18 = smov 16  }
  0x17   : > { %401 = dma.hbm_to_vmem [thread:$0]  (!%p399_p0), %s166_s9, 1024, %s168_s8, %s154_s10, %s574_s11, %s574_s11, %s575_s18  }
  0x18   : > { %p175_p2 = scmp.lt.s32.totalorder %s572_s17, 3 }
  0x1a   : > { %p176_p3 = pnand %p382_p1, %p175_p2 }
  0x1b   : > { %s671_s19 = sand.u32 (!%p176_p3), 1, %s556_s13  }
  0x1c   : > { %179 = sbr.rel (%p176_p3) target bundleno = 174 (0xae), region = 32  ;;  %s383_s21 = sshll.u32 (!%p176_p3), %s671_s19, 6 }
  0x1d   : > { %s182_s23 = scalar_lea.sflag (!%p176_p3), [#allocation3], %s671_s19  ;;  %s185_s29 = scalar_lea.vmem (!%p176_p3), [#allocation2], %s383_s21 }
  0x21   : > { %543 = dma.done.wait (%p644_p8), %s182_s23, 1024  }
  0x22   : > { %545 = vsyncadd (%p644_p8), %s182_s23, 4294966272  ;;  %v576_v0 = vmov 0   ;;  %v218_v1 = vld [vmem:[%s185_s29 + $0x30] sm:$0xff]  ;;  %v219_v2 = vld [vmem:[%s185_s29 + $0x38] sm:$0xff]  ;;  %vm226_vm0 = vcmask 261120   ;;  %s384_s4 = sshll.u32 %s671_s19, 4 }
  0x23   : > { %459 = vset.pattern.permute.xlu0 %v576_v0  ;;  %v216_v3 = vld [vmem:[%s185_s29 + $0x20] sm:$0xff]  ;;  %242 = vmatpush.msra.mxu0 %v218_v1  ;;  %v217_v4 = vld [vmem:[%s185_s29 + $0x28] sm:$0xff]  ;;  %v214_v5 = vld [vmem:[%s185_s29 + $0x10] sm:$0xff]  ;;  %s393_s5 = sshll.u32 %s564_s15, 4  ;;  %s208_s9 = scalar_lea.vmem [#allocation5], %s384_s4 }
  0x24   : > { %262 = vmatpush.msra.mxu1 %v219_v2  ;;  %v215_v6 = vld [vmem:[%s185_s29 + $0x18] sm:$0xff]  ;;  %v220_v7 = vld [vmem:[%s726_s2] sm:$0xff]  ;;  %v213_v9 = vld [vmem:[%s185_s29 + $0x8] sm:$0xff]  ;;  %s286_s8 = scalar_lea.hbm %s727_s3, %s393_s5  ;;  %s288_s10 = sshll.u32 %s208_s9, 4  ;;  %s289_s10 = int_to_ptr.vmem [resolvable:$true] %s288_s10 }
  0x25   : > { %243 = vmatpush.msra.mxu0 %v216_v3  ;;  %v212_v8 = vld [vmem:[%s185_s29] sm:$0xff]  ;;  %223 = vperm.xlu0 %459, %v220_v7   ;;  %s290_s11 = sshll.u32 %s286_s8, 4  ;;  %s273_s18 = scalar_lea.sflag [#allocation4], %s671_s19  ;;  %s291_s11 = int_to_ptr.hbm [resolvable:$true] %s290_s11 }
  0x26   : > { %263 = vmatpush.msra.mxu1 %v217_v4  ;;  %v211_v10 = vld [vmem:[%s725_s1] sm:$0xff]  ;;  %s504_s21 = sshra.s32 %s291_s11, 4  ;;  %s510_s22 = scalar_lea.hbm %s727_s3, 32  ;;  %s505_s21 = int_to_ptr.hbm [resolvable:$true] %s504_s21 }
  0x27   : > { %244 = vmatpush.msra.mxu0 %v214_v5  ;;  %s506_s15 = scalar_lea.hbm %s505_s21, 16  ;;  %p511_p7 = scmp.lt.s32.totalorder %s505_s21, %s727_s3 }
  0x28   : > { %264 = vmatpush.msra.mxu1 %v215_v6  ;;  %p507_p4 = scmp.ne.s32.totalorder %s505_s21, %s506_s15  ;;  %p512_p8 = scmp.lt.s32.totalorder %s510_s22, %s506_s15 }
  0x29   : > { %245 = vmatpush.msra.mxu0 %v212_v8 }
  0x2a   : > { %265 = vmatpush.msra.mxu1 %v213_v9  ;;  %385 = vmatmul.msk.f32.vlgmr.msra.gmra.mxu0 %vm226_vm0, %v211_v10  ;;  %p508_p5 = pnand %p507_p4, %p648_p9  ;;  %p513_p10 = por %p512_p8, %p511_p7 }
  0x2b   : > { %386 = vmatmul.msk.f32.vlgmr.msra.gmra.mxu1 %vm226_vm0, %v211_v10 }
  0x2c   : > { %p509_p6 = pneg %p508_p5 }
  0x2e   : > { %p514_p13 = pnand %p513_p10, %p509_p6 }
  0x97   : > { %v224_v11 = vpop.permute.xlu0 %223 }
  0xa7   : > { %v247_v12 = vpop.f32.mrf.mxu0 }
  0xa8   : > { %v267_v13 = vpop.f32.mrf.mxu1  ;;  %v248_v14 = vadd.f32 %v247_v12, %v224_v11 }
  0xa9   : > { %v268_v15 = vadd.f32 %v267_v13, %v224_v11 }
  0xaa   : > { %270 = vst [vmem:[%s208_s9] sm:$0xff] %v248_v14 }
  0xab   : > { %271 = vst [vmem:[%s208_s9 + $0x8] sm:$0xff] %v268_v15 }
  0xac   : > { %517 = shalt.err (!%p514_p13)
}
  0xad   : > { %396 = dma.vmem_to_hbm [thread:$0]  (%p648_p9), %s289_s10, 256, %s291_s11, %s273_s18  }
  0xae PF: > { %s302_s19 = sand.u32 1, %s552_s12   ;;  %p403_p0 = pnand %p378_p12, %p655_p11 }
  0xaf   : > { %s303_s30 = scalar_lea.sflag [#allocation4], %s302_s19 }
  0xb0   : > { %p404_p1 = pneg %p403_p0 }
  0xb2   : > { %547 = dma.done.wait (%p404_p1), %s303_s30, 256  }
  0xb3   : > { %549 = vsyncadd (%p404_p1), %s303_s30, 4294967040  ;;  %s19_s17 = sadd.s32 1, %s572_s17   ;;  %s732_s12 = smov %s556_s13 }
  0xb4   : > { %p16_p2 = scmp.ge.s32.totalorder %s19_s17, 4   ;;  %s733_s13 = smov %s560_s14 }
  0xb5   : > { %s734_s14 = smov %s653_s26  ;;  %s735_s15 = smov %s568_s16 }
  0xb6   : > { %s736_s16 = smov %s738_s20  ;;  %18 = sbr.rel (!%p16_p2) target bundleno = 6 (0x6), region = 77 }
  0xbb   :  { %309 = vsyncpa [#allocation3], 1 }
  0xbc   :  { %311 = vsyncpa [#allocation3 + $0x1], 1 }
  0xbd   :  { %312 = vsyncpa [#allocation4], 1 }
  0xbe   :  { %314 = vsyncpa [#allocation4 + $0x1], 1 }

</bundles_post_ra>
